<compile_context>
chip_gen: v5e
topology: v5e:2x2
jax: 0.10.0
libtpu: 0.0.40
codegen_flags: <defaults>
</compile_context>

<pallas_src>
import functools
import math

import jax
import jax.numpy as jnp
from jax.experimental import pallas as pl
from jax.experimental.pallas import tpu as pltpu


# ----------------------------------------------------------------------------
# Gaussian weights (sigma = 1.0), separable 1-D taps and the full 3x3 table
# ----------------------------------------------------------------------------
def _gauss_weights_1d(sigma: float = 1.0):
    vals = [math.exp(-(d * d) / (2.0 * sigma * sigma)) for d in (-1, 0, 1)]
    s = sum(vals)
    return [v / s for v in vals]


_G1 = _gauss_weights_1d(1.0)
_W0 = _G1[0]          # == _G1[2] (symmetric)
_W1 = _G1[1]
_W3 = [[_G1[i] * _G1[j] for j in range(3)] for i in range(3)]  # reference only


def _round_up(a: int, b: int) -> int:
    return ((a + b - 1) // b) * b


# ----------------------------------------------------------------------------
# Pallas kernel: separable 3x3 blur on a block of flattened planes (P, H*W)
# ----------------------------------------------------------------------------
def _blur3x3_kernel(mask_ref, x_ref, o_ref, *, w, hw, cdt):
    x = x_ref[...].astype(cdt)                       # (P, H*W)

    # Precomputed edge masks, shape (4, HW); broadcast over the plane axis.
    m = mask_ref[...]
    row0 = m[0:1, :] != 0                            # row == 0
    rowl = m[1:2, :] != 0                            # row == H-1
    col0 = m[2:3, :] != 0                            # col == 0
    coll = m[3:4, :] != 0                            # col == W-1

    # ---- vertical pass: row +/- 1 == lane rotation by +/- W (XLU slot).
    # pltpu.roll needs non-negative shifts; a shift of -s == hw - s (cyclic).
    x_up = pltpu.roll(x, shift=w, axis=1)            # value from row-1 (wraps)
    x_dn = pltpu.roll(x, shift=hw - w, axis=1)       # value from row+1 (wraps)
    x_up = jnp.where(row0, x_dn, x_up)               # reflect: row -1 -> row 1
    x_dn = jnp.where(rowl, x_up, x_dn)               # reflect: row H -> row H-2
    v = _W1 * x + _W0 * (x_up + x_dn)

    # ---- horizontal pass: col +/- 1 == lane rotation by +/- 1.
    v_l = pltpu.roll(v, shift=1, axis=1)             # value from col-1 (wraps)
    v_r = pltpu.roll(v, shift=hw - 1, axis=1)        # value from col+1 (wraps)
    v_l = jnp.where(col0, v_r, v_l)                  # reflect: col -1 -> col 1
    v_r = jnp.where(coll, v_l, v_r)                  # reflect: col W -> col W-2
    o = _W1 * v + _W0 * (v_l + v_r)

    o_ref[...] = o.astype(o_ref.dtype)


def gaussian_blur3x3(x):
    """3x3 depthwise Gaussian blur, reflect padding, NCHW input."""
    B, C, H, W = x.shape
    assert H >= 2 and W >= 2, "reflect padding requires H >= 2 and W >= 2"
    N = B * C
    HW = H * W

    # bf16 stays bf16 (2x VALU throughput / half VMEM on v6e/v7x); else f32.
    cdt = jnp.bfloat16 if x.dtype == jnp.dtype(jnp.bfloat16) else jnp.float32
    itemsize = jnp.dtype(x.dtype).itemsize

    # Free, contiguous reshape: lane-dense last dim, no extra HBM traffic.
    xf = x.reshape(N, HW)

    # Reflect edge masks built once outside the kernel (no in-kernel div/mod).
    idx = jnp.arange(HW, dtype=jnp.int32)
    col = idx % W
    masks = jnp.stack(
        [idx < W, idx >= HW - W, col == 0, col == W - 1]
    ).astype(jnp.int32)                              # (4, HW)

    # ---- generation-aware VMEM limit and block budget -----------------------
    try:
        vmem_cap = pltpu.get_tpu_info().vmem_capacity_bytes
    except Exception:
        vmem_cap = 64 * 1024 * 1024                  # conservative (v7x per-TC)
    vmem_limit = int(min(vmem_cap * 3 // 4, 100 * 1024 * 1024))
    # Total footprint ~= 4x block (double-buffered in/out) + ~6x block of live
    # compute-dtype intermediates -> budget the input block at ~limit/12.
    budget = max(1 << 20, vmem_limit // 12)

    # Planes per block: dtype-aware sublane alignment (8 f32 / 16 bf16 / 32 i8).
    p_align = 8 * max(1, 4 // itemsize)
    plane_bytes = HW * max(itemsize, jnp.dtype(cdt).itemsize)
    p_budget = max(p_align, (budget // plane_bytes) // p_align * p_align)
    if N <= p_align:
        P = N                                        # full-dim block, grid = 1
    else:
        # Cap P so there are >=2 grid steps: both v7x TensorCores get work and
        # the DMA/compute pipeline has something to overlap.
        P = min(p_budget,
                _round_up(pl.cdiv(N, 2), p_align),
                _round_up(N, p_align))
    grid = (pl.cdiv(N, P),)
    # TODO(synk): for a single plane too large for the block budget, also tile
    # H with a halo; currently such planes may exceed the VMEM budget.

    kern = functools.partial(_blur3x3_kernel, w=W, hw=HW, cdt=cdt)
    out = pl.pallas_call(
        kern,
        out_shape=jax.ShapeDtypeStruct((N, HW), x.dtype),
        grid=grid,
        in_specs=[
            pl.BlockSpec((4, HW), lambda i: (0, 0)),   # edge masks (resident)
            pl.BlockSpec((P, HW), lambda i: (i, 0)),
        ],
        out_specs=pl.BlockSpec((P, HW), lambda i: (i, 0)),
        compiler_params=pltpu.CompilerParams(
            dimension_semantics=("parallel",),
            vmem_limit_bytes=vmem_limit,
        ),
    )(masks, xf)
    return out.reshape(B, C, H, W)


# ----------------------------------------------------------------------------
# RandomApply module (JAX port) — PRNG key threaded explicitly (jit-friendly)
# ----------------------------------------------------------------------------
class RandomApply:
    """Apply `fn` to x with probability `p`, else return x unchanged."""

    def __init__(self, fn, p):
        self.fn = fn
        self.p = float(p)

    def __call__(self, x, key):
        u = jax.random.uniform(key, ())
        # PyTorch: if random.random() > p: return x; else: return fn(x)
        return jax.lax.cond(u > self.p, lambda v: v, self.fn, x)


# ----------------------------------------------------------------------------
# Pure-JAX reference for the blurred branch (correctness check)
# ----------------------------------------------------------------------------
def _blur_reference(x):
    B, C, H, W = x.shape
    xp = jnp.pad(x, ((0, 0), (0, 0), (1, 1), (1, 1)), mode="reflect")
    acc = jnp.zeros_like(x, dtype=jnp.float32)
    for di in range(3):
        for dj in range(3):
            acc = acc + jnp.float32(_W3[di][dj]) * xp[:, :, di:di + H, dj:dj + W]
    return acc.astype(x.dtype)


if __name__ == "__main__":
    key = jax.random.PRNGKey(0)
    kx, kgate = jax.random.split(key)
    x = jax.random.normal(kx, (2, 4, 16, 16), dtype=jnp.float32)

    # Check the Pallas fn (blur) against a pure-JAX reference.
    y_kernel = jax.block_until_ready(gaussian_blur3x3(x))
    y_ref = jax.block_until_ready(_blur_reference(x))
    assert jnp.allclose(y_kernel, y_ref, atol=1e-5, rtol=1e-5)

    # Run the RandomApply module itself (random gate around the blur kernel).
    module = RandomApply(gaussian_blur3x3, p=0.8)
    out = jax.block_until_ready(module(x, kgate))
    assert out.shape == x.shape and out.dtype == x.dtype

    print("KERNEL_OK")
</pallas_src>

<mosaic_0001>
module attributes {stable_mosaic.version = 11 : i64} {
  func.func @_blur3x3_kernel(%arg0: i32, %arg1: memref<4x256xi32, #tpu.memory_space<vmem>>, %arg2: memref<8x256xf32, #tpu.memory_space<vmem>>, %arg3: memref<8x256xf32, #tpu.memory_space<vmem>>) attributes {dimension_semantics = [#tpu.dimension_semantics<parallel>], iteration_bounds = array<i64: 1>, scalar_prefetch = 0 : i64, scratch_operands = 0 : i64, tpu.core_type = #tpu.core_type<tc>, window_params = [{pipeline_mode = #tpu.pipeline_mode<synchronous>, transform_indices = @transform_0, window_bounds = array<i64: 4, 256>}, {transform_indices = @transform_1, window_bounds = array<i64: 8, 256>}, {transform_indices = @transform_2, window_bounds = array<i64: 8, 256>}]} {
    %c0 = arith.constant 0 : index
    %c0_0 = arith.constant 0 : index
    %0 = vector.load %arg2[%c0, %c0_0] : memref<8x256xf32, #tpu.memory_space<vmem>>, vector<8x256xf32>
    %c0_1 = arith.constant 0 : index
    %c0_2 = arith.constant 0 : index
    %1 = vector.load %arg1[%c0_1, %c0_2] : memref<4x256xi32, #tpu.memory_space<vmem>>, vector<4x256xi32>
    %2 = vector.extract_strided_slice %1 {offsets = [0, 0], sizes = [1, 256], strides = [1, 1]} : vector<4x256xi32> to vector<1x256xi32>
    %c0_i32 = arith.constant 0 : i32
    %3 = vector.broadcast %c0_i32 : i32 to vector<1x256xi32>
    %4 = arith.cmpi ne, %2, %3 : vector<1x256xi32>
    %5 = vector.extract_strided_slice %1 {offsets = [1, 0], sizes = [1, 256], strides = [1, 1]} : vector<4x256xi32> to vector<1x256xi32>
    %c0_i32_3 = arith.constant 0 : i32
    %6 = vector.broadcast %c0_i32_3 : i32 to vector<1x256xi32>
    %7 = arith.cmpi ne, %5, %6 : vector<1x256xi32>
    %8 = vector.extract_strided_slice %1 {offsets = [2, 0], sizes = [1, 256], strides = [1, 1]} : vector<4x256xi32> to vector<1x256xi32>
    %c0_i32_4 = arith.constant 0 : i32
    %9 = vector.broadcast %c0_i32_4 : i32 to vector<1x256xi32>
    %10 = arith.cmpi ne, %8, %9 : vector<1x256xi32>
    %11 = vector.extract_strided_slice %1 {offsets = [3, 0], sizes = [1, 256], strides = [1, 1]} : vector<4x256xi32> to vector<1x256xi32>
    %c0_i32_5 = arith.constant 0 : i32
    %12 = vector.broadcast %c0_i32_5 : i32 to vector<1x256xi32>
    %13 = arith.cmpi ne, %11, %12 : vector<1x256xi32>
    %c16_i32 = arith.constant 16 : i32
    %14 = tpu.dynamic_rotate %0 by %c16_i32 dim 1 : vector<8x256xf32>, i32 -> vector<8x256xf32>
    %c240_i32 = arith.constant 240 : i32
    %15 = tpu.dynamic_rotate %0 by %c240_i32 dim 1 : vector<8x256xf32>, i32 -> vector<8x256xf32>
    %16 = vector.shape_cast %4 : vector<1x256xi1> to vector<1x256xi1>
    %17 = vector.broadcast %16 : vector<1x256xi1> to vector<8x256xi1>
    %18 = arith.select %17, %15, %14 : vector<8x256xi1>, vector<8x256xf32>
    %19 = vector.shape_cast %7 : vector<1x256xi1> to vector<1x256xi1>
    %20 = vector.broadcast %19 : vector<1x256xi1> to vector<8x256xi1>
    %21 = arith.select %20, %18, %15 : vector<8x256xi1>, vector<8x256xf32>
    %cst = arith.constant 0.451862752 : f32
    %22 = vector.broadcast %cst : f32 to vector<8x256xf32>
    %23 = arith.mulf %22, %0 : vector<8x256xf32>
    %24 = arith.addf %18, %21 : vector<8x256xf32>
    %cst_6 = arith.constant 0.274068624 : f32
    %25 = vector.broadcast %cst_6 : f32 to vector<8x256xf32>
    %26 = arith.mulf %25, %24 : vector<8x256xf32>
    %27 = arith.addf %23, %26 : vector<8x256xf32>
    %c1_i32 = arith.constant 1 : i32
    %28 = tpu.dynamic_rotate %27 by %c1_i32 dim 1 : vector<8x256xf32>, i32 -> vector<8x256xf32>
    %c255_i32 = arith.constant 255 : i32
    %29 = tpu.dynamic_rotate %27 by %c255_i32 dim 1 : vector<8x256xf32>, i32 -> vector<8x256xf32>
    %30 = vector.shape_cast %10 : vector<1x256xi1> to vector<1x256xi1>
    %31 = vector.broadcast %30 : vector<1x256xi1> to vector<8x256xi1>
    %32 = arith.select %31, %29, %28 : vector<8x256xi1>, vector<8x256xf32>
    %33 = vector.shape_cast %13 : vector<1x256xi1> to vector<1x256xi1>
    %34 = vector.broadcast %33 : vector<1x256xi1> to vector<8x256xi1>
    %35 = arith.select %34, %32, %29 : vector<8x256xi1>, vector<8x256xf32>
    %cst_7 = arith.constant 0.451862752 : f32
    %36 = vector.broadcast %cst_7 : f32 to vector<8x256xf32>
    %37 = arith.mulf %36, %27 : vector<8x256xf32>
    %38 = arith.addf %32, %35 : vector<8x256xf32>
    %cst_8 = arith.constant 0.274068624 : f32
    %39 = vector.broadcast %cst_8 : f32 to vector<8x256xf32>
    %40 = arith.mulf %39, %38 : vector<8x256xf32>
    %41 = arith.addf %37, %40 : vector<8x256xf32>
    %c0_9 = arith.constant 0 : index
    %c0_10 = arith.constant 0 : index
    %42 = vector.load %arg3[%c0_9, %c0_10] : memref<8x256xf32, #tpu.memory_space<vmem>>, vector<8x256xf32>
    tpu.vector_store %arg3[%c0_9, %c0_10], %41 {strides = array<i32>} : memref<8x256xf32, #tpu.memory_space<vmem>>, vector<8x256xf32>,
    return
  }
  func.func @transform_0(%arg0: i32) -> (i32, i32) {
    %c0_i32 = arith.constant 0 : i32
    %c0_i32_0 = arith.constant 0 : i32
    %c0_i32_1 = arith.constant 0 : i32
    return %c0_i32, %c0_i32_0 : i32, i32
  }
  func.func @transform_1(%arg0: i32) -> (i32, i32) {
    %c0_i32 = arith.constant 0 : i32
    %c0_i32_0 = arith.constant 0 : i32
    return %arg0, %c0_i32 : i32, i32
  }
  func.func @transform_2(%arg0: i32) -> (i32, i32) {
    %c0_i32 = arith.constant 0 : i32
    %c0_i32_0 = arith.constant 0 : i32
    return %arg0, %c0_i32 : i32, i32
  }
}

</mosaic_0001>

<bundles_post_ra>
// kernel: tpu_custom_call.1
= control target key start
LH: loop header
LB: loop body
LE: loop exit
PB: predicated region body
PF: predicated region fallthrough
CT: control target
= control target key end

     0   :  { %7 = vsyncpa [#allocation3], 0  ;;  %s261_s0 = inlined_call_operand.hbm [shape: s32[4,256], index: 0, kind: input, shape index: {}]   ;;  %s262_s1 = inlined_call_operand.hbm [shape: f32[8,256], index: 1, kind: input, shape index: {}]   ;;  %s263_s2 = inlined_call_operand.hbm [shape: f32[8,256], index: 2, kind: output, shape index: {}]  }
   0x1   :  { %8 = vsyncpa [#allocation6], 0 }
   0x2   :  { %9 = vsyncpa [#allocation4], 0  ;;  %s15_s11 = sshll.u32 %s261_s0, 4  ;;  %s229_s12 = smov [#allocation2]   ;;  %s16_s11 = int_to_ptr.hbm [resolvable:$true] %s15_s11 }
   0x3   :  { %s17_s13 = sshll.u32 %s229_s12, 4  ;;  %s26_s16 = sshll.u32 %s262_s1, 4  ;;  %s18_s13 = int_to_ptr.vmem [resolvable:$true] %s17_s13  ;;  %s27_s16 = int_to_ptr.hbm [resolvable:$true] %s26_s16 }
   0x4   :  { %20 = dma.hbm_to_vmem [thread:$0]  %s16_s11, 128, %s18_s13, [#allocation3]  }
   0x5   :  { %s230_s17 = smov [#allocation5]  }
   0x6   :  { %s28_s18 = sshll.u32 %s230_s17, 4  ;;  %s29_s18 = int_to_ptr.vmem [resolvable:$true] %s28_s18 }
   0x7   :  { %31 = dma.hbm_to_vmem [thread:$0]  %s27_s16, 256, %s29_s18, [#allocation6]  }
   0x8   :  { %223 = dma.done.wait [#allocation3], 128  }
   0x9   :  { %224 = vsyncadd [#allocation3], 4294967168 }
   0xa   :  { %225 = dma.done.wait [#allocation6], 256  }
   0xb   :  { %226 = vsyncadd [#allocation6], 4294967040  ;;  %v40_v0 = vld [vmem:[#allocation5] sm:$0xff]  ;;  %s231_s0 = smov 112   ;;  %s232_s19 = smov 16   ;;  %v41_v1 = vld [vmem:[#allocation5 + $0x8] sm:$0xff]  ;;  %v48_v5 = vlaneseq }
   0xc   :  { %53 = vrot.lane.b32.xlu1 %v40_v0, %s231_s0  ;;  %44 = vrot.lane.b32.xlu0 %v40_v0, %s232_s19  ;;  %v42_v2 = vld [vmem:[#allocation2] sm:$0xff]  ;;  %v233_v3 = vmov 0   ;;  %v77_v27 = vmul.f32 0.45186275, %v40_v0  ;;  %v78_v28 = vmul.f32 0.45186275, %v41_v1 }
   0xd   :  { %vm43_vm0 = vcmp.ne.s32.totalorder %v42_v2, 0  ;;  %v49_v12 = vand.u32 127, %v48_v5  ;;  %s234_s1 = smov 127   ;;  %s235_s20 = smov 1  }
   0xe   :  { %v60_v4 = vsel %vm43_vm0, 1, %v233_v3  ;;  %s236_s21 = smov [#allocation7]   ;;  %s132_s25 = sshll.u32 %s263_s2, 4  ;;  %s133_s25 = int_to_ptr.hbm [resolvable:$true] %s132_s25 }
   0xf   :  { %v61_v6 = vperm.slane %v60_v4, 0  ;;  %v62_v7 = vperm.slane %v60_v4, 4  ;;  %v69_v10 = vperm.slane %v60_v4, 1  ;;  %v70_v11 = vperm.slane %v60_v4, 5  ;;  %s130_s22 = sshll.u32 %s236_s21, 4  ;;  %s131_s22 = int_to_ptr.vmem [resolvable:$true] %s130_s22 }
  0x10   :  { %vm57_vm1 = vcmp.lt.s32.totalorder %v49_v12, 112  ;;  %vm50_vm2 = vcmp.lt.s32.totalorder %v49_v12, 16  ;;  %v99_v36 = vperm.slane %v60_v4, 2  ;;  %v100_v37 = vperm.slane %v60_v4, 6 }
  0x11   :  { %v63_v13 = vperm.slane %v61_v6, 0  ;;  %v64_v14 = vperm.slane %v62_v7, 0  ;;  %v71_v15 = vperm.slane %v69_v10, 1  ;;  %v72_v16 = vperm.slane %v70_v11, 1 }
  0x12   :  { %v107_v38 = vperm.slane %v60_v4, 3  ;;  %v108_v39 = vperm.slane %v60_v4, 7  ;;  %v101_v40 = vperm.slane %v99_v36, 2  ;;  %v102_v41 = vperm.slane %v100_v37, 2 }
  0x13   :  { %vm65_vm3 = vcmp.eq.s32.totalorder %v63_v13, 1  ;;  %vm66_vm4 = vcmp.eq.s32.totalorder %v64_v14, 1  ;;  %vm73_vm5 = vcmp.eq.s32.totalorder %v71_v15, 1  ;;  %vm74_vm6 = vcmp.eq.s32.totalorder %v72_v16, 1 }
  0x14   :  { %55 = vrot.lane.b32.xlu1 %v41_v1, %s231_s0  ;;  %46 = vrot.lane.b32.xlu0 %v41_v1, %s232_s19  ;;  %v109_v42 = vperm.slane %v107_v38, 3  ;;  %v110_v43 = vperm.slane %v108_v39, 3  ;;  %vm89_vm7 = vcmp.lt.s32.totalorder %v49_v12, 1  ;;  %vm96_vm8 = vcmp.lt.s32.totalorder %v49_v12, 127 }
  0x15   :  { %vm103_vm9 = vcmp.eq.s32.totalorder %v101_v40, 1  ;;  %vm104_vm10 = vcmp.eq.s32.totalorder %v102_v41, 1 }
  0x16   :  { %vm111_vm11 = vcmp.eq.s32.totalorder %v109_v42, 1  ;;  %vm112_vm12 = vcmp.eq.s32.totalorder %v110_v43, 1 }
  0x7e   :  { %v54_v8 = vpop.permute.xlu1 %53  ;;  %v45_v9 = vpop.permute.xlu0 %44 }
  0x86   :  { %v56_v17 = vpop.permute.xlu1 %55  ;;  %v47_v18 = vpop.permute.xlu0 %46 }
  0x87   :  { %v58_v19 = vsel %vm57_vm1, %v54_v8, %v56_v17  ;;  %v59_v20 = vsel %vm57_vm1, %v56_v17, %v54_v8  ;;  %v51_v21 = vsel %vm50_vm2, %v45_v9, %v47_v18  ;;  %v52_v22 = vsel %vm50_vm2, %v47_v18, %v45_v9 }
  0x88   :  { %v67_v23 = vsel %vm65_vm3, %v58_v19, %v52_v22  ;;  %v68_v24 = vsel %vm66_vm4, %v59_v20, %v51_v21 }
  0x89   :  { %v75_v25 = vsel %vm73_vm5, %v67_v23, %v58_v19  ;;  %v76_v26 = vsel %vm74_vm6, %v68_v24, %v59_v20 }
  0x8a   :  { %v79_v29 = vadd.f32 %v75_v25, %v67_v23  ;;  %v80_v30 = vadd.f32 %v76_v26, %v68_v24 }
  0x8c   :  { %v81_v31 = vmul.f32 0.27406862, %v79_v29  ;;  %v82_v32 = vmul.f32 0.27406862, %v80_v30 }
  0x8e   :  { %v84_v33 = vadd.f32 %v82_v32, %v78_v28  ;;  %v83_v34 = vadd.f32 %v81_v31, %v77_v27 }
  0x90   :  { %94 = vrot.lane.b32.xlu1 %v84_v33, %s234_s1  ;;  %92 = vrot.lane.b32.xlu0 %v83_v34, %s234_s1  ;;  %v116_v57 = vmul.f32 0.45186275, %v84_v33  ;;  %v115_v58 = vmul.f32 0.45186275, %v83_v34 }
  0x91   :  { %85 = vrot.lane.b32.xlu2 %v83_v34, %s235_s20 }
  0x99   :  { %87 = vrot.lane.b32.xlu2 %v84_v33, %s235_s20 }
  0xeb   :  { %v86_v35 = vpop.permute.xlu2 %85 }
  0xf3   :  { %v88_v44 = vpop.permute.xlu2 %87 }
  0xf4   :  { %v90_v47 = vsel %vm89_vm7, %v86_v35, %v88_v44  ;;  %v91_v48 = vsel %vm89_vm7, %v88_v44, %v86_v35 }
 0x102   :  { %v95_v45 = vpop.permute.xlu1 %94  ;;  %v93_v46 = vpop.permute.xlu0 %92 }
 0x103   :  { %v97_v49 = vsel %vm96_vm8, %v93_v46, %v95_v45  ;;  %v98_v50 = vsel %vm96_vm8, %v95_v45, %v93_v46 }
 0x104   :  { %v105_v51 = vsel %vm103_vm9, %v97_v49, %v91_v48  ;;  %v106_v52 = vsel %vm104_vm10, %v98_v50, %v90_v47 }
 0x105   :  { %v113_v53 = vsel %vm111_vm11, %v105_v51, %v97_v49  ;;  %v114_v54 = vsel %vm112_vm12, %v106_v52, %v98_v50 }
 0x106   :  { %v117_v55 = vadd.f32 %v113_v53, %v105_v51  ;;  %v118_v56 = vadd.f32 %v114_v54, %v106_v52 }
 0x108   :  { %v119_v59 = vmul.f32 0.27406862, %v117_v55  ;;  %v120_v60 = vmul.f32 0.27406862, %v118_v56 }
 0x10a   :  { %v121_v61 = vadd.f32 %v119_v59, %v115_v58  ;;  %v122_v62 = vadd.f32 %v120_v60, %v116_v57 }
 0x10c   :  { %123 = vst [vmem:[#allocation7] sm:$0xff] %v121_v61 }
 0x10d   :  { %124 = vst [vmem:[#allocation7 + $0x8] sm:$0xff] %v122_v62 }
 0x10e   :  { %135 = dma.vmem_to_hbm [thread:$0]  %s131_s22, 256, %s133_s25, [#allocation4]  }
 0x10f   :  { %227 = dma.done.wait [#allocation4], 256  }
 0x110   :  { %228 = vsyncadd [#allocation4], 4294967040 }
 0x111   :  { %140 = vsyncpa [#allocation3], 1 }
 0x112   :  { %141 = vsyncpa [#allocation6], 1 }
 0x113   :  { %142 = vsyncpa [#allocation4], 1 }

</bundles_post_ra>
